<compile_context>
chip_gen: v6e
topology: v6e:2x2x1
jax: 0.10.0
libtpu: 0.0.40
codegen_flags: <defaults>
</compile_context>

<pallas_src>
import functools

import jax
import jax.numpy as jnp
import numpy as np
from jax.experimental import pallas as pl
from jax.experimental.pallas import tpu as pltpu

ROUND_DIGIT = 2
SCALE = 10.0 ** ROUND_DIGIT


def cb_bonus_kernel(obsT_ref, tneg2_ref, tnorm_ref, counts_ref, thresh_ref,
                    bonus_ref):
    """One (N_tile, T_tile) block of the count-based bonus.

    obsT_ref:   (D, tn) bf16   integer-scaled rounded observations, transposed
    tneg2_ref:  (tt, D) bf16   -2 * integer-scaled stored states
    tnorm_ref:  (tt, 1) f32    ||scaled stored state||^2
    counts_ref: (tt, 1) f32    visit counts
    thresh_ref: (1, tn) f32    0.5 - ||scaled rounded obs||^2  (rnorm folded in)
    bonus_ref:  (1, tn) f32    resident across the T axis: accumulates counts,
                               finalized to 1/(count+1) on the last T tile.
    """
    t_idx = pl.program_id(1)

    @pl.when(t_idx == 0)
    def _init():
        bonus_ref[...] = jnp.zeros_like(bonus_ref)

    # MXU (bf16 -> f32 accumulate): cross[a, b] = -2 * <table_a, obs_b>, (tt, tn).
    # (tt, D) @ (D, tn): the streaming RHS is lane-dense (minor dim = tn).
    cross = jax.lax.dot_general(
        tneg2_ref[...], obsT_ref[...], (((1,), (0,)), ((), ())),
        preferred_element_type=jnp.float32)

    # Exact-equality indicator via squared distance between integer-scaled
    # states: distinct rounded states differ by >= 1, so compare against 0.5.
    # rnorm is folded into thresh, so the epilogue is one add + one compare.
    match = (tnorm_ref[...] + cross) < thresh_ref[...]            # (tt, tn) bool

    # Count gather: VPU select + sublane reduce (counts stay exact in f32; no
    # second (tt, tn) f32 matmul on the MXU).
    cnt = jnp.sum(jnp.where(match, counts_ref[...], 0.0),
                  axis=0, keepdims=True)                          # (1, tn)

    bonus_ref[...] += cnt

    @pl.when(t_idx == pl.num_programs(1) - 1)
    def _finalize():
        # bonus = 1 / (count + 1); exact division (tolerance-checked vs host).
        bonus_ref[...] = 1.0 / (bonus_ref[...] + 1.0)


@functools.partial(jax.jit, static_argnames=("tn", "tt"))
def cb_forward(ob_no, table, counts, *, tn=512, tt=2048):
    """Pallas equivalent of CBModel.forward.

    ob_no:  (N, D) float32 raw observations
    table:  (T, D) float32 previously-seen rounded states (the dict keys)
    counts: (T,)   float32 visit counts for those states (the dict values)
    returns (N,)   float32 exploration bonus = 1 / (count + 1)
    """
    ob_no = jnp.asarray(ob_no, jnp.float32)
    table = jnp.asarray(table, jnp.float32)
    counts = jnp.asarray(counts, jnp.float32)

    N, D = ob_no.shape
    T = table.shape[0]

    # Shrink tiles for small problems (don't pad far past the data) while
    # keeping lane/sublane alignment (tn multiple of 128, tt multiple of 256).
    # Large defaults keep per-step work well above the ~0.35us grid overhead
    # on real workloads; 48 MiB VMEM cap below keeps v7x (64 MiB) safe.
    # TODO(synk): for small-N / huge-T workloads, also split T across a leading
    # "parallel" axis (per-shard partial counts summed in the wrapper) so both
    # v7x TensorCores stay busy when grid_n collapses to 1.
    tn = min(tn, max(128, pl.cdiv(max(N, 1), 128) * 128))
    tt = min(tt, max(256, pl.cdiv(max(T, 1), 256) * 256))

    Np = pl.cdiv(max(N, 1), tn) * tn
    Tp = pl.cdiv(max(T, 1), tt) * tt

    # Integer-scaled rounded states.  Exact bf16 matching assumes
    # |scaled values| <= 256 (raw |obs| <= 2.56 at round_digit=2).
    # TODO(synk): for wider observation ranges keep the matmul operands in f32
    # (no runtime guard here; out-of-range values would match inexactly).
    r_s = jnp.round(ob_no * SCALE)                 # (N, D) integer-valued f32
    t_s = jnp.round(table * SCALE)                 # (T, D) integer-valued f32

    rnorm = jnp.sum(r_s * r_s, axis=-1)            # (N,)
    tnorm = jnp.sum(t_s * t_s, axis=-1)            # (T,)

    # Pad to tile multiples.  Pad table rows are all-zero with count 0, so a
    # pad "match" contributes nothing to the gathered count.  Obs are fed
    # transposed (D, Np) so the MXU RHS block (D, tn) is lane-dense.
    obsT_p = jnp.pad(r_s.astype(jnp.bfloat16), ((0, Np - N), (0, 0))).T
    tneg2_p = jnp.pad((-2.0 * t_s).astype(jnp.bfloat16), ((0, Tp - T), (0, 0)))
    tnorm_p = jnp.pad(tnorm, (0, Tp - T)).reshape(Tp, 1)
    counts_p = jnp.pad(counts, (0, Tp - T)).reshape(Tp, 1)
    thresh_p = (0.5 - jnp.pad(rnorm, (0, Np - N))).reshape(1, Np)

    grid_n, grid_t = Np // tn, Tp // tt

    # Advisory cost: obs/thresh/out move once; table/tnorm/counts are
    # re-streamed once per obs tile (grid_n passes over the T axis).
    cost = pl.CostEstimate(
        flops=2 * Np * Tp * D + 4 * Np * Tp,
        transcendentals=0,
        bytes_accessed=(Np * D * 2 + Np * 4 + Np * 4
                        + grid_n * (Tp * D * 2 + Tp * 4 + Tp * 4)),
    )

    bonus = pl.pallas_call(
        cb_bonus_kernel,
        out_shape=jax.ShapeDtypeStruct((1, Np), jnp.float32),
        grid_spec=pltpu.PrefetchScalarGridSpec(
            num_scalar_prefetch=0,
            grid=(grid_n, grid_t),
            in_specs=[
                pl.BlockSpec((D, tn), lambda i, t: (0, i)),   # obs^T (resident over t)
                pl.BlockSpec((tt, D), lambda i, t: (t, 0)),   # -2 * table
                pl.BlockSpec((tt, 1), lambda i, t: (t, 0)),   # table norms
                pl.BlockSpec((tt, 1), lambda i, t: (t, 0)),   # counts
                pl.BlockSpec((1, tn), lambda i, t: (0, i)),   # 0.5 - obs norms
            ],
            out_specs=pl.BlockSpec((1, tn), lambda i, t: (0, i)),
        ),
        compiler_params=pltpu.CompilerParams(
            dimension_semantics=("parallel", "arbitrary"),
            vmem_limit_bytes=48 * 1024 * 1024,
        ),
        cost_estimate=cost,
    )(obsT_p, tneg2_p, tnorm_p, counts_p, thresh_p)

    return bonus[0, :N]


if __name__ == "__main__":
    N, D, T = 8, 8, 16  # batch, obs dim, number of previously-seen states

    key = jax.random.PRNGKey(0)
    k_obs, k_tab = jax.random.split(key)

    # Observations to score (values in [0, 1) -> scaled integers in [0, 100)).
    obs = jax.random.uniform(k_obs, (N, D), dtype=jnp.float32)

    # "state2count" table: the first 4 observations were seen before (counts
    # 1,2,3,5); the remaining 12 stored states are random rounded states.
    seen = jnp.round(obs[:4] * SCALE) / SCALE
    unseen = jnp.round(
        jax.random.uniform(k_tab, (T - 4, D), dtype=jnp.float32) * SCALE) / SCALE
    table = jnp.concatenate([seen, unseen], axis=0)
    counts = jnp.array([1.0, 2.0, 3.0, 5.0] + [7.0] * (T - 4), dtype=jnp.float32)

    bonus = jax.block_until_ready(cb_forward(obs, table, counts))

    # Host dict reference mirroring CBModel.forward (keys = integer-scaled states).
    # TODO(synk): the mutable dict in update() stays host-side; only forward()
    # is a kernel (the host update path must also dedup table rows).
    tab_keys = np.asarray(jnp.round(table * SCALE), dtype=np.int64)
    state2count = {tuple(k.tolist()): float(c)
                   for k, c in zip(tab_keys, np.asarray(counts))}
    obs_keys = np.asarray(jnp.round(obs * SCALE), dtype=np.int64)
    expected = np.array(
        [1.0 / (state2count.get(tuple(k.tolist()), 0.0) + 1.0) for k in obs_keys],
        dtype=np.float32,
    )

    np.testing.assert_allclose(np.asarray(bonus), expected, rtol=1e-6, atol=1e-6)
    print("KERNEL_OK")
</pallas_src>

<mosaic_0001>
module attributes {stable_mosaic.version = 11 : i64} {
  func.func @cb_bonus_kernel(%arg0: i32, %arg1: i32, %arg2: memref<8x128xbf16, #tpu.memory_space<vmem>>, %arg3: memref<256x8xbf16, #tpu.memory_space<vmem>>, %arg4: memref<256x1xf32, #tpu.memory_space<vmem>>, %arg5: memref<256x1xf32, #tpu.memory_space<vmem>>, %arg6: memref<1x128xf32, #tpu.memory_space<vmem>>, %arg7: memref<1x128xf32, #tpu.memory_space<vmem>>) attributes {dimension_semantics = [#tpu.dimension_semantics<parallel>, #tpu.dimension_semantics<arbitrary>], iteration_bounds = array<i64: 1, 1>, scalar_prefetch = 0 : i64, scratch_operands = 0 : i64, tpu.core_type = #tpu.core_type<tc>, window_params = [{transform_indices = @transform_0, window_bounds = array<i64: 8, 128>}, {transform_indices = @transform_1, window_bounds = array<i64: 256, 8>}, {transform_indices = @transform_2, window_bounds = array<i64: 256, 1>}, {transform_indices = @transform_3, window_bounds = array<i64: 256, 1>}, {transform_indices = @transform_4, window_bounds = array<i64: 1, 128>}, {transform_indices = @transform_5, window_bounds = array<i64: 1, 128>}]} {
    %c0_i32 = arith.constant 0 : i32
    %0 = arith.cmpi eq, %arg1, %c0_i32 : i32
    %1 = arith.extui %0 : i1 to i32
    %c0_i32_0 = arith.constant 0 : i32
    %2 = arith.cmpi ne, %1, %c0_i32_0 : i32
    scf.if %2 {
      %cst_18 = arith.constant 0.000000e+00 : f32
      %25 = vector.broadcast %cst_18 : f32 to vector<1x128xf32>
      %c0_19 = arith.constant 0 : index
      %c0_20 = arith.constant 0 : index
      %26 = vector.load %arg7[%c0_19, %c0_20] : memref<1x128xf32, #tpu.memory_space<vmem>>, vector<1x128xf32>
      tpu.vector_store %arg7[%c0_19, %c0_20], %25 {strides = array<i32>} : memref<1x128xf32, #tpu.memory_space<vmem>>, vector<1x128xf32>,
    } else {
    }
    %c0 = arith.constant 0 : index
    %c0_1 = arith.constant 0 : index
    %3 = vector.load %arg3[%c0, %c0_1] : memref<256x8xbf16, #tpu.memory_space<vmem>>, vector<256x8xbf16>
    %c0_2 = arith.constant 0 : index
    %c0_3 = arith.constant 0 : index
    %4 = vector.load %arg2[%c0_2, %c0_3] : memref<8x128xbf16, #tpu.memory_space<vmem>>, vector<8x128xbf16>
    %cst = arith.constant dense<0.000000e+00> : vector<256x128xf32>
    %5 = tpu.matmul %3, %4, %cst {dimension_numbers = #tpu.dot_dimension_numbers<[1], [0], [0], [1], [0, 0, 1, 1], [], []>} : vector<256x8xbf16>, vector<8x128xbf16>, vector<256x128xf32> -> vector<256x128xf32>
    %c0_4 = arith.constant 0 : index
    %c0_5 = arith.constant 0 : index
    %6 = vector.load %arg4[%c0_4, %c0_5] : memref<256x1xf32, #tpu.memory_space<vmem>>, vector<256x1xf32>
    %7 = vector.broadcast %6 : vector<256x1xf32> to vector<256x128xf32>
    %8 = arith.addf %7, %5 : vector<256x128xf32>
    %c0_6 = arith.constant 0 : index
    %c0_7 = arith.constant 0 : index
    %9 = vector.load %arg6[%c0_6, %c0_7] : memref<1x128xf32, #tpu.memory_space<vmem>>, vector<1x128xf32>
    %10 = vector.broadcast %9 : vector<1x128xf32> to vector<256x128xf32>
    %11 = arith.cmpf olt, %8, %10 : vector<256x128xf32>
    %c0_8 = arith.constant 0 : index
    %c0_9 = arith.constant 0 : index
    %12 = vector.load %arg5[%c0_8, %c0_9] : memref<256x1xf32, #tpu.memory_space<vmem>>, vector<256x1xf32>
    %cst_10 = arith.constant 0.000000e+00 : f32
    %13 = vector.shape_cast %12 : vector<256x1xf32> to vector<256x1xf32>
    %14 = vector.broadcast %13 : vector<256x1xf32> to vector<256x128xf32>
    %15 = vector.broadcast %cst_10 : f32 to vector<256x128xf32>
    %16 = arith.select %11, %14, %15 : vector<256x128xi1>, vector<256x128xf32>
    %cst_11 = arith.constant dense<0.000000e+00> : vector<128xf32>
    %17 = vector.multi_reduction <add>, %16, %cst_11 [0] : vector<256x128xf32> to vector<128xf32>
    %18 = vector.shape_cast %17 : vector<128xf32> to vector<1x128xf32>
    %c0_12 = arith.constant 0 : index
    %c0_13 = arith.constant 0 : index
    %19 = vector.load %arg7[%c0_12, %c0_13] : memref<1x128xf32, #tpu.memory_space<vmem>>, vector<1x128xf32>
    %20 = arith.addf %19, %18 : vector<1x128xf32>
    %c0_14 = arith.constant 0 : index
    %c0_15 = arith.constant 0 : index
    %21 = vector.load %arg7[%c0_14, %c0_15] : memref<1x128xf32, #tpu.memory_space<vmem>>, vector<1x128xf32>
    tpu.vector_store %arg7[%c0_14, %c0_15], %20 {strides = array<i32>} : memref<1x128xf32, #tpu.memory_space<vmem>>, vector<1x128xf32>,
    %c0_i32_16 = arith.constant 0 : i32
    %22 = arith.cmpi eq, %arg1, %c0_i32_16 : i32
    %23 = arith.extui %22 : i1 to i32
    %c0_i32_17 = arith.constant 0 : i32
    %24 = arith.cmpi ne, %23, %c0_i32_17 : i32
    scf.if %24 {
      %c0_18 = arith.constant 0 : index
      %c0_19 = arith.constant 0 : index
      %25 = vector.load %arg7[%c0_18, %c0_19] : memref<1x128xf32, #tpu.memory_space<vmem>>, vector<1x128xf32>
      %cst_20 = arith.constant 1.000000e+00 : f32
      %26 = vector.broadcast %cst_20 : f32 to vector<1x128xf32>
      %27 = arith.addf %25, %26 : vector<1x128xf32>
      %cst_21 = arith.constant 1.000000e+00 : f32
      %28 = vector.broadcast %cst_21 : f32 to vector<1x128xf32>
      %29 = arith.divf %28, %27 : vector<1x128xf32>
      %c0_22 = arith.constant 0 : index
      %c0_23 = arith.constant 0 : index
      %30 = vector.load %arg7[%c0_22, %c0_23] : memref<1x128xf32, #tpu.memory_space<vmem>>, vector<1x128xf32>
      tpu.vector_store %arg7[%c0_22, %c0_23], %29 {strides = array<i32>} : memref<1x128xf32, #tpu.memory_space<vmem>>, vector<1x128xf32>,
    } else {
    }
    return
  }
  func.func @transform_0(%arg0: i32, %arg1: i32) -> (i32, i32) {
    %c0_i32 = arith.constant 0 : i32
    %c0_i32_0 = arith.constant 0 : i32
    return %c0_i32, %arg0 : i32, i32
  }
  func.func @transform_1(%arg0: i32, %arg1: i32) -> (i32, i32) {
    %c0_i32 = arith.constant 0 : i32
    %c0_i32_0 = arith.constant 0 : i32
    return %arg1, %c0_i32 : i32, i32
  }
  func.func @transform_2(%arg0: i32, %arg1: i32) -> (i32, i32) {
    %c0_i32 = arith.constant 0 : i32
    %c0_i32_0 = arith.constant 0 : i32
    return %arg1, %c0_i32 : i32, i32
  }
  func.func @transform_3(%arg0: i32, %arg1: i32) -> (i32, i32) {
    %c0_i32 = arith.constant 0 : i32
    %c0_i32_0 = arith.constant 0 : i32
    return %arg1, %c0_i32 : i32, i32
  }
  func.func @transform_4(%arg0: i32, %arg1: i32) -> (i32, i32) {
    %c0_i32 = arith.constant 0 : i32
    %c0_i32_0 = arith.constant 0 : i32
    return %c0_i32, %arg0 : i32, i32
  }
  func.func @transform_5(%arg0: i32, %arg1: i32) -> (i32, i32) {
    %c0_i32 = arith.constant 0 : i32
    %c0_i32_0 = arith.constant 0 : i32
    return %c0_i32, %arg0 : i32, i32
  }
}

</mosaic_0001>

<bundles_post_ra>
// kernel: cb_forward.1
= control target key start
LH: loop header
LB: loop body
LE: loop exit
PB: predicated region body
PF: predicated region fallthrough
CT: control target
= control target key end

     0   :  { %vm188_vm0 = vcmask 1043456   ;;  %v1002_v0 = vmov 0   ;;  %vm139_vm1 = vcmask 64512   ;;  %s1492_s2 = inlined_call_operand.vmem [shape: f32[256,1], index: 2, kind: input, shape index: {}]   ;;  %s1493_s0 = inlined_call_operand.vmem [shape: bf16[8,128], index: 0, kind: input, shape index: {}]   ;;  %s1494_s1 = inlined_call_operand.vmem [shape: bf16[256,8], index: 1, kind: input, shape index: {}]   ;;  %s1495_s3 = inlined_call_operand.vmem [shape: f32[256,1], index: 3, kind: input, shape index: {}]   ;;  %s1496_s5 = inlined_call_operand.vmem [shape: f32[1,128], index: 5, kind: output, shape index: {}]   ;;  %s1497_s4 = inlined_call_operand.vmem [shape: f32[1,128], index: 4, kind: input, shape index: {}]  }
   0x1   :  { %983 = vset.pattern.permute.xlu1 %v1002_v0  ;;  %982 = vset.pattern.permute.xlu0 %v1002_v0  ;;  %v355_v1 = vld [vmem:[%s1492_s2 + $0x10] sm:$0xff]  ;;  %v353_v2 = vld [vmem:[%s1492_s2] sm:$0xff]  ;;  %v356_v7 = vld [vmem:[%s1492_s2 + $0x18] sm:$0xff] }
   0x2   :  { %v58_v3 = vld [vmem:[%s1493_s0] sm:$0xf]  ;;  %397 = vperm.xlu1 %983, %v355_v1   ;;  %387 = vperm.xlu0 %982, %v353_v2   ;;  %v354_v8 = vld [vmem:[%s1492_s2 + $0x8] sm:$0xff]  ;;  %v988_v13 = vld [vmem:[%s1494_s1 + $0x10] sm:$0xff]  }
   0x3   :  { %v190_v4 = vsel %vm188_vm0, %v58_v3, 0  ;;  %v984_v5 = vld [vmem:[%s1494_s1] sm:$0xff]   ;;  %978 = vmatprep.subr.msk.bf16.mxu0 %vm188_vm0, %v58_v3  ;;  %979 = vmatprep.subr.msk.bf16.mxu1 %vm188_vm0, %v58_v3  ;;  %v986_v9 = vld [vmem:[%s1494_s1 + $0x8] sm:$0xff]   ;;  %v989_v14 = vld [vmem:[%s1494_s1 + $0x50] sm:$0xff]  }
   0x4   :  { %v985_v6 = vld [vmem:[%s1494_s1 + $0x40] sm:$0xff]   ;;  %943 = vmatpush3.bf16.msra.mxu0 %v190_v4  ;;  %977 = vmatpush3.bf16.msra.mxu1 %v190_v4  ;;  %v987_v10 = vld [vmem:[%s1494_s1 + $0x48] sm:$0xff]   ;;  %v360_v15 = vld [vmem:[%s1492_s2 + $0x38] sm:$0xff] }
   0x5   :  { %944 = vmatprep.mubr.msk.bf16.mxu0 %vm139_vm1, %v984_v5  ;;  %960 = vmatprep.mubr.msk.bf16.mxu1 %vm139_vm1, %v985_v6  ;;  %v358_v11 = vld [vmem:[%s1492_s2 + $0x28] sm:$0xff]  ;;  %v357_v12 = vld [vmem:[%s1492_s2 + $0x20] sm:$0xff]  ;;  %v359_v16 = vld [vmem:[%s1492_s2 + $0x30] sm:$0xff] }
   0x6   :  { %402 = vperm.xlu1 %983, %v356_v7   ;;  %392 = vperm.xlu0 %982, %v354_v8   ;;  %v990_v17 = vld [vmem:[%s1494_s1 + $0x18] sm:$0xff]   ;;  %v992_v19 = vld [vmem:[%s1494_s1 + $0x20] sm:$0xff]   ;;  %v362_v20 = vld [vmem:[%s1492_s2 + $0x48] sm:$0xff] }
   0x7   :  { %945 = vmatmul.mubr.msk.bf16.vlgmr.msra.gmra.mxu0 %vm139_vm1, %v986_v9  ;;  %961 = vmatmul.mubr.msk.bf16.vlgmr.msra.gmra.mxu1 %vm139_vm1, %v987_v10  ;;  %v991_v18 = vld [vmem:[%s1494_s1 + $0x58] sm:$0xff]   ;;  %v361_v21 = vld [vmem:[%s1492_s2 + $0x40] sm:$0xff]  ;;  %v363_v24 = vld [vmem:[%s1492_s2 + $0x50] sm:$0xff] }
   0x8   :  { %948 = vmatprep.mubr.msk.bf16.mxu0 %vm139_vm1, %v988_v13  ;;  %964 = vmatprep.mubr.msk.bf16.mxu1 %vm139_vm1, %v989_v14  ;;  %v994_v22 = vld [vmem:[%s1494_s1 + $0x60] sm:$0xff]   ;;  %v364_v23 = vld [vmem:[%s1492_s2 + $0x58] sm:$0xff]  ;;  %v993_v25 = vld [vmem:[%s1494_s1 + $0x28] sm:$0xff]  }
   0x9   :  { %v995_v26 = vld [vmem:[%s1494_s1 + $0x68] sm:$0xff]   ;;  %v996_v27 = vld [vmem:[%s1494_s1 + $0x30] sm:$0xff]   ;;  %v365_v30 = vld [vmem:[%s1492_s2 + $0x60] sm:$0xff] }
   0xa   :  { %412 = vperm.xlu1 %983, %v358_v11   ;;  %407 = vperm.xlu0 %982, %v357_v12   ;;  %v366_v28 = vld [vmem:[%s1492_s2 + $0x68] sm:$0xff]  ;;  %v998_v29 = vld [vmem:[%s1494_s1 + $0x70] sm:$0xff]   ;;  %v368_v31 = vld [vmem:[%s1492_s2 + $0x78] sm:$0xff] }
   0xb   :  { %v367_v32 = vld [vmem:[%s1492_s2 + $0x70] sm:$0xff]  ;;  %v997_v33 = vld [vmem:[%s1494_s1 + $0x38] sm:$0xff]   ;;  %v370_v35 = vld [vmem:[%s1492_s2 + $0x88] sm:$0xff] }
   0xc   :  { %v999_v34 = vld [vmem:[%s1494_s1 + $0x78] sm:$0xff]   ;;  %v369_v36 = vld [vmem:[%s1492_s2 + $0x80] sm:$0xff]  ;;  %v371_v38 = vld [vmem:[%s1492_s2 + $0x90] sm:$0xff] }
   0xd   :  { %v372_v37 = vld [vmem:[%s1492_s2 + $0x98] sm:$0xff]  ;;  %v374_v39 = vld [vmem:[%s1492_s2 + $0xa8] sm:$0xff]  ;;  %v373_v40 = vld [vmem:[%s1492_s2 + $0xa0] sm:$0xff] }
   0xe   :  { %422 = vperm.xlu1 %983, %v360_v15   ;;  %417 = vperm.xlu0 %982, %v359_v16   ;;  %v616_v41 = vld [vmem:[%s1495_s3] sm:$0xff]  ;;  %v375_v42 = vld [vmem:[%s1492_s2 + $0xb0] sm:$0xff]  ;;  %v617_v44 = vld [vmem:[%s1495_s3 + $0x8] sm:$0xff] }
   0xf   :  { %949 = vmatmul.mubr.msk.bf16.gmra.mxu0 %vm139_vm1, %v990_v17  ;;  %965 = vmatmul.mubr.msk.bf16.gmra.mxu1 %vm139_vm1, %v991_v18  ;;  %v618_v43 = vld [vmem:[%s1495_s3 + $0x10] sm:$0xff]  ;;  %v620_v45 = vld [vmem:[%s1495_s3 + $0x20] sm:$0xff]  ;;  %v619_v46 = vld [vmem:[%s1495_s3 + $0x18] sm:$0xff] }
  0x10   :  { %952 = vmatprep.mubr.msk.bf16.mxu0 %vm139_vm1, %v992_v19  ;;  %968 = vmatprep.mubr.msk.bf16.mxu1 %vm139_vm1, %v994_v22  ;;  %v622_v47 = vld [vmem:[%s1495_s3 + $0x30] sm:$0xff]  ;;  %v621_v48 = vld [vmem:[%s1495_s3 + $0x28] sm:$0xff]  ;;  %v624_v49 = vld [vmem:[%s1495_s3 + $0x40] sm:$0xff] }
  0x11   :  { %v623_v50 = vld [vmem:[%s1495_s3 + $0x38] sm:$0xff]  ;;  %v626_v51 = vld [vmem:[%s1495_s3 + $0x50] sm:$0xff]  ;;  %v625_v52 = vld [vmem:[%s1495_s3 + $0x48] sm:$0xff] }
  0x12   :  { %432 = vperm.xlu1 %983, %v362_v20   ;;  %427 = vperm.xlu0 %982, %v361_v21   ;;  %v628_v53 = vld [vmem:[%s1495_s3 + $0x60] sm:$0xff]  ;;  %v627_v54 = vld [vmem:[%s1495_s3 + $0x58] sm:$0xff]  ;;  %v630_v55 = vld [vmem:[%s1495_s3 + $0x70] sm:$0xff] }
  0x13   :  { %v629_v56 = vld [vmem:[%s1495_s3 + $0x68] sm:$0xff]  ;;  %v632_v57 = vld [vmem:[%s1495_s3 + $0x80] sm:$0xff]  ;;  %v631_v58 = vld [vmem:[%s1495_s3 + $0x78] sm:$0xff] }
  0x14   :  { %v634_v59 = vld [vmem:[%s1495_s3 + $0x90] sm:$0xff]  ;;  %v633_v60 = vld [vmem:[%s1495_s3 + $0x88] sm:$0xff]  ;;  %v636_v61 = vld [vmem:[%s1495_s3 + $0xa0] sm:$0xff] }
  0x15   :  { %v635_v62 = vld [vmem:[%s1495_s3 + $0x98] sm:$0xff]  ;;  %v637_v0 = vld [vmem:[%s1495_s3 + $0xa8] sm:$0xff]  ;;  %v377_v1 = vld [vmem:[%s1492_s2 + $0xc0] sm:$0xff] }
  0x16   :  { %442 = vperm.xlu1 %983, %v364_v23   ;;  %437 = vperm.xlu0 %982, %v363_v24   ;;  %v376_v63 = vld [vmem:[%s1492_s2 + $0xb8] sm:$0xff]  ;;  %v638_v2 = vld [vmem:[%s1495_s3 + $0xb0] sm:$0xff]  ;;  %v378_v3 = vld [vmem:[%s1492_s2 + $0xc8] sm:$0xff] }
  0x17   :  { %953 = vmatmul.mubr.msk.bf16.gmra.mxu0 %vm139_vm1, %v993_v25  ;;  %969 = vmatmul.mubr.msk.bf16.gmra.mxu1 %vm139_vm1, %v995_v26  ;;  %v639_v4 = vld [vmem:[%s1495_s3 + $0xb8] sm:$0xff]  ;;  %v379_v5 = vld [vmem:[%s1492_s2 + $0xd0] sm:$0xff]  ;;  %v640_v6 = vld [vmem:[%s1495_s3 + $0xc0] sm:$0xff] }
  0x18   :  { %956 = vmatprep.mubr.msk.bf16.mxu0 %vm139_vm1, %v996_v27  ;;  %972 = vmatprep.mubr.msk.bf16.mxu1 %vm139_vm1, %v998_v29  ;;  %v380_v7 = vld [vmem:[%s1492_s2 + $0xd8] sm:$0xff]  ;;  %v641_v8 = vld [vmem:[%s1495_s3 + $0xc8] sm:$0xff]  ;;  %v381_v9 = vld [vmem:[%s1492_s2 + $0xe0] sm:$0xff]  ;;  %v1003_v27 = vmov 0.0  }
  0x19   :  { %v642_v10 = vld [vmem:[%s1495_s3 + $0xd0] sm:$0xff]  ;;  %v382_v11 = vld [vmem:[%s1492_s2 + $0xe8] sm:$0xff]  ;;  %v643_v12 = vld [vmem:[%s1495_s3 + $0xd8] sm:$0xff]  ;;  %25 = vst [vmem:[%s1496_s5] sm:$0x1] %v1003_v27 }
  0x1a   :  { %452 = vperm.xlu1 %983, %v366_v28   ;;  %447 = vperm.xlu0 %982, %v365_v30   ;;  %v383_v13 = vld [vmem:[%s1492_s2 + $0xf0] sm:$0xff]  ;;  %v644_v14 = vld [vmem:[%s1495_s3 + $0xe0] sm:$0xff]  ;;  %v384_v15 = vld [vmem:[%s1492_s2 + $0xf8] sm:$0xff] }
  0x1b   :  { %v645_v16 = vld [vmem:[%s1495_s3 + $0xe8] sm:$0xff]  ;;  %v647_v17 = vld [vmem:[%s1495_s3 + $0xf8] sm:$0xff]  ;;  %v646_v18 = vld [vmem:[%s1495_s3 + $0xf0] sm:$0xff] }
  0x1e   :  { %462 = vperm.xlu1 %983, %v368_v31   ;;  %457 = vperm.xlu0 %982, %v367_v32  }
  0x1f   :  { %957 = vmatmul.mubr.msk.bf16.gmra.mxu0 %vm139_vm1, %v997_v33  ;;  %973 = vmatmul.mubr.msk.bf16.gmra.mxu1 %vm139_vm1, %v999_v34 }
  0x22   :  { %472 = vperm.xlu1 %983, %v370_v35   ;;  %467 = vperm.xlu0 %982, %v369_v36  }
  0x26   :  { %482 = vperm.xlu1 %983, %v372_v37   ;;  %477 = vperm.xlu0 %982, %v371_v38  }
  0x2a   :  { %492 = vperm.xlu1 %983, %v374_v39   ;;  %487 = vperm.xlu0 %982, %v373_v40  }
  0x2e   :  { %650 = vperm.xlu1 %983, %v616_v41   ;;  %497 = vperm.xlu0 %982, %v375_v42  }
  0x32   :  { %660 = vperm.xlu1 %983, %v618_v43   ;;  %655 = vperm.xlu0 %982, %v617_v44  }
  0x36   :  { %670 = vperm.xlu1 %983, %v620_v45   ;;  %665 = vperm.xlu0 %982, %v619_v46  }
  0x3a   :  { %680 = vperm.xlu1 %983, %v622_v47   ;;  %675 = vperm.xlu0 %982, %v621_v48  }
  0x3e   :  { %690 = vperm.xlu1 %983, %v624_v49   ;;  %685 = vperm.xlu0 %982, %v623_v50  }
  0x42   :  { %700 = vperm.xlu1 %983, %v626_v51   ;;  %695 = vperm.xlu0 %982, %v625_v52  }
  0x46   :  { %710 = vperm.xlu1 %983, %v628_v53   ;;  %705 = vperm.xlu0 %982, %v627_v54  }
  0x4a   :  { %720 = vperm.xlu1 %983, %v630_v55   ;;  %715 = vperm.xlu0 %982, %v629_v56  }
  0x4e   :  { %730 = vperm.xlu1 %983, %v632_v57   ;;  %725 = vperm.xlu0 %982, %v631_v58  }
  0x52   :  { %740 = vperm.xlu1 %983, %v634_v59   ;;  %735 = vperm.xlu0 %982, %v633_v60  }
  0x56   :  { %750 = vperm.xlu1 %983, %v636_v61   ;;  %745 = vperm.xlu0 %982, %v635_v62  }
  0x5a   :  { %502 = vperm.xlu1 %983, %v376_v63   ;;  %755 = vperm.xlu0 %982, %v637_v0  }
  0x5e   :  { %507 = vperm.xlu1 %983, %v377_v1   ;;  %760 = vperm.xlu0 %982, %v638_v2  }
  0x62   :  { %512 = vperm.xlu1 %983, %v378_v3   ;;  %765 = vperm.xlu0 %982, %v639_v4   ;;  %v1363_v3 = vld [vmem:[%s1497_s4] ss:$0 sm:$0xff] }
  0x66   :  { %517 = vperm.xlu1 %983, %v379_v5   ;;  %770 = vperm.xlu0 %982, %v640_v6  }
  0x6a   :  { %522 = vperm.xlu1 %983, %v380_v7   ;;  %775 = vperm.xlu0 %982, %v641_v8  }
  0x6e   :  { %527 = vperm.xlu1 %983, %v381_v9   ;;  %780 = vperm.xlu0 %982, %v642_v10  }
  0x72   :  { %532 = vperm.xlu1 %983, %v382_v11   ;;  %785 = vperm.xlu0 %982, %v643_v12  }
  0x76   :  { %537 = vperm.xlu1 %983, %v383_v13   ;;  %790 = vperm.xlu0 %982, %v644_v14  }
  0x7a   :  { %542 = vperm.xlu1 %983, %v384_v15   ;;  %795 = vperm.xlu0 %982, %v645_v16  }
  0x7d   :  { %v398_v19 = vpop.permute.xlu1 %397  ;;  %v388_v20 = vpop.permute.xlu0 %387 }
  0x7e   :  { %805 = vperm.xlu1 %983, %v647_v17   ;;  %800 = vperm.xlu0 %982, %v646_v18  }
  0x81   :  { %v403_v21 = vpop.permute.xlu1 %402  ;;  %v393_v22 = vpop.permute.xlu0 %392 }
  0x85   :  { %v1293_v23 = vpop.permute.xlu1 %412  ;;  %v1295_v24 = vpop.permute.xlu0 %407 }
  0x89   :  { %v1297_v25 = vpop.permute.xlu1 %422  ;;  %v1299_v26 = vpop.permute.xlu0 %417 }
  0x8d   :  { %v1304_v28 = vpop.permute.xlu1 %432  ;;  %v1306_v29 = vpop.permute.xlu0 %427 }
  0x91   :  { %v1308_v30 = vpop.permute.xlu1 %442  ;;  %v1310_v31 = vpop.permute.xlu0 %437 }
  0x95   :  { %v1312_v32 = vpop.permute.xlu1 %452  ;;  %v1314_v33 = vpop.permute.xlu0 %447 }
  0x99   :  { %v1316_v34 = vpop.permute.xlu1 %462  ;;  %v1318_v35 = vpop.permute.xlu0 %457 }
  0x9d   :  { %v1320_v36 = vpop.permute.xlu1 %472  ;;  %v1322_v37 = vpop.permute.xlu0 %467 }
  0xa1   :  { %v1324_v38 = vpop.permute.xlu1 %482  ;;  %v1326_v39 = vpop.permute.xlu0 %477 }
  0xa5   :  { %v1328_v40 = vpop.permute.xlu1 %492  ;;  %v1330_v41 = vpop.permute.xlu0 %487 }
  0xa9   :  { %v651_v42 = vpop.permute.xlu1 %650  ;;  %v1332_v43 = vpop.permute.xlu0 %497 }
  0xad   :  { %v661_v44 = vpop.permute.xlu1 %660  ;;  %v656_v45 = vpop.permute.xlu0 %655 }
  0xb1   :  { %v671_v46 = vpop.permute.xlu1 %670  ;;  %v666_v47 = vpop.permute.xlu0 %665 }
  0xb5   :  { %v1334_v48 = vpop.permute.xlu1 %680  ;;  %v676_v49 = vpop.permute.xlu0 %675 }
  0xb9   :  { %v1336_v50 = vpop.permute.xlu1 %690  ;;  %v1338_v51 = vpop.permute.xlu0 %685 }
  0xbd   :  { %v1340_v52 = vpop.permute.xlu1 %700  ;;  %v1342_v53 = vpop.permute.xlu0 %695 }
  0xc1   :  { %v1344_v54 = vpop.permute.xlu1 %710  ;;  %v1346_v55 = vpop.permute.xlu0 %705 }
  0xc5   :  { %v1348_v56 = vpop.permute.xlu1 %720  ;;  %v1350_v57 = vpop.permute.xlu0 %715 }
  0xc7   :  { %v946_v58 = vpop.f32.mrf.mxu0  ;;  %v1352_v59 = vpop.f32.mrf.mxu1 }
  0xc8   :  { %v547_v2 = vadd.f32 %v946_v58, %v398_v19 }
  0xc9   :  { %v226_v60 = vpop.f32.mrf.mxu0  ;;  %v1354_v61 = vpop.permute.xlu1 %730 }
  0xca   :  { %v545_v62 = vadd.f32 %v388_v20, %v226_v60  ;;  %v1356_v63 = vpop.f32.mrf.mxu1  ;;  %v1358_v0 = vpop.permute.xlu0 %725  ;;  %vm586_vm3 = vcmp.lt.f32.partialorder %v547_v2, %v1363_v3 }
  0xcb   :  { %v947_v1 = vpop.f32.mrf.mxu0  ;;  %v810_v19 = vsel %vm586_vm3, %v661_v44, 0.0 }
  0xcc   :  { %vm584_vm2 = vcmp.lt.f32.partialorder %v545_v62, %v1363_v3  ;;  %v548_v6 = vadd.f32 %v947_v1, %v403_v21  ;;  %v1368_v7 = vpop.f32.mrf.mxu1 }
  0xcd   :  { %v229_v4 = vpop.f32.mrf.mxu0  ;;  %v1365_v5 = vpop.permute.xlu1 %740  ;;  %v808_v11 = vsel %vm584_vm2, %v651_v42, 0.0 }
  0xce   :  { %v546_v8 = vadd.f32 %v393_v22, %v229_v4  ;;  %v1370_v9 = vpop.permute.xlu0 %735  ;;  %vm587_vm5 = vcmp.lt.f32.partialorder %v548_v6, %v1363_v3  ;;  %v1377_v16 = vpop.f32.mrf.mxu1 }
  0xcf   :  { %v950_v10 = vpop.f32.mrf.mxu0  ;;  %v811_v27 = vsel %vm587_vm5, %v666_v47, 0.0 }
  0xd0   :  { %vm585_vm4 = vcmp.lt.f32.partialorder %v546_v8, %v1363_v3  ;;  %v551_v22 = vadd.f32 %v950_v10, %v1299_v26  ;;  %v1386_v58 = vpop.f32.mrf.mxu1 }
  0xd1   :  { %v809_v12 = vsel %vm585_vm4, %v656_v45, 0.0  ;;  %v242_v13 = vpop.f32.mrf.mxu0  ;;  %v1374_v14 = vpop.permute.xlu1 %750 }
  0xd2   :  { %v840_v15 = vadd.f32 %v809_v12, %v808_v11  ;;  %v549_v17 = vadd.f32 %v1295_v24, %v242_v13  ;;  %v1380_v18 = vpop.permute.xlu0 %745  ;;  %vm590_vm7 = vcmp.lt.f32.partialorder %v551_v22, %v1363_v3  ;;  %v1396_v8 = vpop.f32.mrf.mxu1 }
  0xd3   :  { %v951_v20 = vpop.f32.mrf.mxu0 }
  0xd4   :  { %v841_v21 = vadd.f32 %v840_v15, %v810_v19  ;;  %vm588_vm6 = vcmp.lt.f32.partialorder %v549_v17, %v1363_v3  ;;  %v552_v62 = vadd.f32 %v951_v20, %v1297_v25  ;;  %v1406_v17 = vpop.f32.mrf.mxu1 }
  0xd5   :  { %v245_v42 = vpop.f32.mrf.mxu0  ;;  %v1384_v45 = vpop.permute.xlu1 %502  ;;  %v812_v44 = vsel %vm588_vm6, %v671_v46, 0.0  ;;  %v814_v46 = vsel %vm590_vm7, %v1334_v48, 0.0 }
  0xd6   :  { %v842_v60 = vadd.f32 %v841_v21, %v811_v27  ;;  %v550_v24 = vadd.f32 %v1293_v23, %v245_v42  ;;  %v1390_v1 = vpop.permute.xlu0 %755  ;;  %vm591_vm9 = vcmp.lt.f32.partialorder %v552_v62, %v1363_v3 }
  0xd7   :  { %v954_v2 = vpop.f32.mrf.mxu0 }
  0xd8   :  { %v843_v26 = vadd.f32 %v842_v60, %v812_v44  ;;  %vm589_vm8 = vcmp.lt.f32.partialorder %v550_v24, %v1363_v3  ;;  %v555_v13 = vadd.f32 %v954_v2, %v1310_v31  ;;  %v309_v60 = vpop.f32.mrf.mxu1 }
  0xd9   :  { %v813_v47 = vsel %vm589_vm8, %v676_v49, 0.0  ;;  %v258_v4 = vpop.f32.mrf.mxu0  ;;  %v1394_v6 = vpop.permute.xlu1 %507  ;;  %v815_v49 = vsel %vm591_vm9, %v1338_v51, 0.0 }
  0xda   :  { %v844_v25 = vadd.f32 %v843_v26, %v813_v47  ;;  %v553_v23 = vadd.f32 %v1306_v29, %v258_v4  ;;  %v1400_v10 = vpop.permute.xlu0 %760  ;;  %vm594_vm11 = vcmp.lt.f32.partialorder %v555_v13, %v1363_v3 }
  0xdb   :  { %v955_v11 = vpop.f32.mrf.mxu0  ;;  %v818_v62 = vsel %vm594_vm11, %v1340_v52, 0.0 }
  0xdc   :  { %v845_v12 = vadd.f32 %v844_v25, %v814_v46  ;;  %vm592_vm10 = vcmp.lt.f32.partialorder %v553_v23, %v1363_v3  ;;  %v556_v20 = vadd.f32 %v955_v11, %v1308_v30  ;;  %v970_v23 = vpop.f32.mrf.mxu1  ;;  %v562_v11 = vadd.f32 %v1320_v36, %v1377_v16 }
  0xdd   :  { %v261_v15 = vpop.f32.mrf.mxu0  ;;  %v816_v48 = vsel %vm592_vm10, %v1336_v50, 0.0  ;;  %v1413_v22 = vpop.permute.xlu1 %512 }
  0xde   :  { %v846_v19 = vadd.f32 %v845_v12, %v815_v49  ;;  %v554_v29 = vadd.f32 %v1304_v28, %v261_v15  ;;  %v1410_v21 = vpop.permute.xlu0 %765  ;;  %vm595_vm13 = vcmp.lt.f32.partialorder %v556_v20, %v1363_v3  ;;  %v322_v12 = vpop.f32.mrf.mxu1  ;;  %v563_v49 = vadd.f32 %v1352_v59, %v1326_v39 }
  0xdf   :  { %v958_v27 = vpop.f32.mrf.mxu0  ;;  %v819_v26 = vsel %vm595_vm13, %v1346_v55, 0.0  ;;  %vm601_vm3 = vcmp.lt.f32.partialorder %v562_v11, %v1363_v3  ;;  %v564_v15 = vadd.f32 %v1368_v7, %v1324_v38  ;;  %v566_v39 = vadd.f32 %v1328_v40, %v309_v60 }
  0xe0   :  { %v847_v31 = vadd.f32 %v846_v19, %v816_v48  ;;  %vm593_vm12 = vcmp.lt.f32.partialorder %v554_v29, %v1363_v3  ;;  %v559_v44 = vadd.f32 %v958_v27, %v1318_v35  ;;  %v561_v35 = vadd.f32 %v1322_v37, %v1356_v63  ;;  %v971_v16 = vpop.f32.mrf.mxu1 }
  0xe1   :  { %v817_v51 = vsel %vm593_vm12, %v1342_v53, 0.0  ;;  %v274_v42 = vpop.f32.mrf.mxu0  ;;  %v1426_v53 = vpop.permute.xlu1 %517  ;;  %v825_v29 = vsel %vm601_vm3, %v1370_v9, 0.0  ;;  %vm602_vm4 = vcmp.lt.f32.partialorder %v563_v49, %v1363_v3  ;;  %vm603_vm6 = vcmp.lt.f32.partialorder %v564_v15, %v1363_v3 }
  0xe2   :  { %v848_v30 = vadd.f32 %v847_v31, %v817_v51  ;;  %v557_v28 = vadd.f32 %v1314_v33, %v274_v42  ;;  %v1423_v2 = vpop.permute.xlu0 %770  ;;  %vm598_vm15 = vcmp.lt.f32.partialorder %v559_v44, %v1363_v3  ;;  %vm600_vm2 = vcmp.lt.f32.partialorder %v561_v35, %v1363_v3 }
  0xe3   :  { %v959_v50 = vpop.f32.mrf.mxu0  ;;  %v824_v36 = vsel %vm600_vm2, %v1354_v61, 0.0  ;;  %v826_v48 = vsel %vm602_vm4, %v1365_v5, 0.0  ;;  %v325_v61 = vpop.f32.mrf.mxu1  ;;  %v567_v9 = vadd.f32 %v1386_v58, %v1332_v43  ;;  %vm605_vm7 = vcmp.lt.f32.partialorder %v566_v39, %v1363_v3 }
  0xe4   :  { %v849_v24 = vadd.f32 %v848_v30, %v818_v62  ;;  %vm596_vm14 = vcmp.lt.f32.partialorder %v557_v28, %v1363_v3  ;;  %v560_v25 = vadd.f32 %v959_v50, %v1316_v34  ;;  %v568_v5 = vadd.f32 %v1406_v17, %v1384_v45 }
  0xe5   :  { %v277_v47 = vpop.f32.mrf.mxu0  ;;  %v820_v52 = vsel %vm596_vm14, %v1344_v54, 0.0  ;;  %v822_v54 = vsel %vm598_vm15, %v1348_v56, 0.0  ;;  %v523_v13 = vpop.permute.xlu1 %522  ;;  %v565_v56 = vadd.f32 %v1330_v41, %v1396_v8  ;;  %v827_v41 = vsel %vm603_vm6, %v1380_v18, 0.0 }
  0xe6   :  { %v850_v4 = vadd.f32 %v849_v24, %v819_v26  ;;  %v558_v33 = vadd.f32 %v1312_v32, %v277_v47  ;;  %vm599_vm1 = vcmp.lt.f32.partialorder %v560_v25, %v1363_v3  ;;  %v776_v32 = vpop.permute.xlu0 %775  ;;  %v974_v7 = vpop.f32.mrf.mxu1  ;;  %v829_v42 = vsel %vm605_vm7, %v1390_v1, 0.0 }
  0xe7   :  { %v823_v63 = vsel %vm599_vm1, %v1358_v0, 0.0  ;;  %vm604_vm5 = vcmp.lt.f32.partialorder %v565_v56, %v1363_v3  ;;  %vm606_vm8 = vcmp.lt.f32.partialorder %v567_v9, %v1363_v3  ;;  %v569_v18 = vadd.f32 %v1394_v6, %v322_v12  ;;  %v877_v56 = vld [vmem:[%s1496_s5] sm:$0x1] }
  0xe8   :  { %v851_v46 = vadd.f32 %v850_v4, %v820_v52  ;;  %vm597_vm0 = vcmp.lt.f32.partialorder %v558_v33, %v1363_v3  ;;  %v828_v40 = vsel %vm604_vm5, %v1374_v14, 0.0  ;;  %v338_v30 = vpop.f32.mrf.mxu1  ;;  %v830_v43 = vsel %vm606_vm8, %v1400_v10, 0.0 }
  0xe9   :  { %v821_v55 = vsel %vm597_vm0, %v1350_v57, 0.0  ;;  %v528_v0 = vpop.permute.xlu1 %527  ;;  %vm607_vm9 = vcmp.lt.f32.partialorder %v568_v5, %v1363_v3  ;;  %v570_v58 = vadd.f32 %v1413_v22, %v325_v61  ;;  %v571_v1 = vadd.f32 %v970_v23, %v1426_v53 }
  0xea   :  { %v852_v34 = vadd.f32 %v851_v46, %v821_v55  ;;  %v781_v20 = vpop.permute.xlu0 %780  ;;  %v831_v62 = vsel %vm607_vm9, %v1410_v21, 0.0  ;;  %v975_v45 = vpop.f32.mrf.mxu1  ;;  %vm608_vm10 = vcmp.lt.f32.partialorder %v569_v18, %v1363_v3  ;;  %v572_v24 = vadd.f32 %v971_v16, %v523_v13 }
  0xeb   :  { %v832_v6 = vsel %vm608_vm10, %v1423_v2, 0.0  ;;  %vm609_vm11 = vcmp.lt.f32.partialorder %v570_v58, %v1363_v3  ;;  %vm610_vm12 = vcmp.lt.f32.partialorder %v571_v1, %v1363_v3  ;;  %v573_v47 = vadd.f32 %v528_v0, %v338_v30 }
  0xec   :  { %v853_v37 = vadd.f32 %v852_v34, %v822_v54  ;;  %v833_v44 = vsel %vm609_vm11, %v776_v32, 0.0  ;;  %v341_v26 = vpop.f32.mrf.mxu1  ;;  %v834_v4 = vsel %vm610_vm12, %v781_v20, 0.0  ;;  %vm611_vm13 = vcmp.lt.f32.partialorder %v572_v24, %v1363_v3 }
  0xed   :  { %v533_v31 = vpop.permute.xlu1 %532  ;;  %vm612_vm14 = vcmp.lt.f32.partialorder %v573_v47, %v1363_v3 }
  0xee   :  { %v854_v57 = vadd.f32 %v853_v37, %v823_v63  ;;  %v786_v27 = vpop.permute.xlu0 %785  ;;  %v574_v53 = vadd.f32 %v533_v31, %v341_v26 }
  0xef   :  { %v835_v23 = vsel %vm611_vm13, %v786_v27, 0.0 }
  0xf0   :  { %v855_v19 = vadd.f32 %v854_v57, %v824_v36  ;;  %vm613_vm15 = vcmp.lt.f32.partialorder %v574_v53, %v1363_v3 }
  0xf1   :  { %v538_v17 = vpop.permute.xlu1 %537 }
  0xf2   :  { %v856_v59 = vadd.f32 %v855_v19, %v825_v29  ;;  %v791_v60 = vpop.permute.xlu0 %790  ;;  %v575_v2 = vadd.f32 %v974_v7, %v538_v17 }
  0xf3   :  { %v836_v46 = vsel %vm612_vm14, %v791_v60, 0.0 }
  0xf4   :  { %v857_v38 = vadd.f32 %v856_v59, %v826_v48  ;;  %vm614_vm1 = vcmp.lt.f32.partialorder %v575_v2, %v1363_v3 }
  0xf5   :  { %v543_v25 = vpop.permute.xlu1 %542 }
  0xf6   :  { %v858_v8 = vadd.f32 %v857_v38, %v827_v41  ;;  %v796_v21 = vpop.permute.xlu0 %795  ;;  %v576_v35 = vadd.f32 %v975_v45, %v543_v25 }
  0xf7   :  { %v837_v34 = vsel %vm613_vm15, %v796_v21, 0.0 }
  0xf8   :  { %v859_v51 = vadd.f32 %v858_v8, %v828_v40  ;;  %vm615_vm0 = vcmp.lt.f32.partialorder %v576_v35, %v1363_v3 }
  0xf9   :  { %v806_v12 = vpop.permute.xlu1 %805 }
  0xfa   :  { %v860_v28 = vadd.f32 %v859_v51, %v829_v42  ;;  %v801_v11 = vpop.permute.xlu0 %800  ;;  %v839_v37 = vsel %vm615_vm0, %v806_v12, 0.0 }
  0xfb   :  { %v838_v54 = vsel %vm614_vm1, %v801_v11, 0.0 }
  0xfc   :  { %v861_v14 = vadd.f32 %v860_v28, %v830_v43 }
  0xfe   :  { %v862_v50 = vadd.f32 %v861_v14, %v831_v62 }
 0x100   :  { %v863_v10 = vadd.f32 %v862_v50, %v832_v6 }
 0x102   :  { %v864_v22 = vadd.f32 %v863_v10, %v833_v44 }
 0x104   :  { %v865_v33 = vadd.f32 %v864_v22, %v834_v4 }
 0x106   :  { %v866_v52 = vadd.f32 %v865_v33, %v835_v23 }
 0x108   :  { %v867_v55 = vadd.f32 %v866_v52, %v836_v46 }
 0x10a   :  { %v868_v32 = vadd.f32 %v867_v55, %v837_v34 }
 0x10c   :  { %v869_v13 = vadd.f32 %v868_v32, %v838_v54 }
 0x10e   :  { %v870_v63 = vadd.f32 %v869_v13, %v839_v37 }
 0x110   :  { %v871_v49 = vrot.slane %v870_v63, 4 }
 0x112   :  { %v872_v57 = vadd.f32 %v871_v49, %v870_v63 }
 0x114   :  { %v873_v36 = vrot.slane %v872_v57, 2 }
 0x116   :  { %v874_v16 = vadd.f32 %v873_v36, %v872_v57 }
 0x118   :  { %v875_v15 = vrot.slane %v874_v16, 1 }
 0x11a   :  { %v876_v19 = vadd.f32 %v875_v15, %v874_v16 }
 0x11c   :  { %v878_v20 = vadd.f32 %v877_v56, %v876_v19 }
 0x11e   :  { %879 = vst [vmem:[%s1496_s5] sm:$0x1] %v878_v20 }
 0x125   :  { %v883_v3 = vld [vmem:[%s1496_s5] sm:$0x1] }
 0x126   :  { %v884_v29 = vadd.f32 1.0, %v883_v3 }
 0x128   :  { %1000 = vrcp.f32 %v884_v29 }
 0x135   :  { %v1001_v0 = vpop.eup %1000 }
 0x136   :  { %887 = vst [vmem:[%s1496_s5] sm:$0x1] %v1001_v0 }

</bundles_post_ra>
